<compile_context>
chip_gen: v7x
topology: tpu7x:2x2x1
jax: 0.10.0
libtpu: 0.0.40
codegen_flags: <defaults>
</compile_context>

<pallas_src>
import functools

import jax
import jax.numpy as jnp
from jax.experimental import pallas as pl
from jax.experimental.pallas import tpu as pltpu

_LANES = 128
_SUBLANES = 8
_MAX_BLOCK_ROWS = 2048  # 2048x128 f32 = 1 MiB per input per pipeline buffer


def _focal_tversky_sums_kernel(p_ref, t_ref, out_ref,
                               acc_pt, acc_p, acc_t,
                               *, n_valid, needs_mask):
    """Accumulates per-lane partials of sum(p*t), sum(p), sum(t) over the grid.

    The expensive cross-lane/sublane reduction runs only on the final step.
    """
    i = pl.program_id(0)

    @pl.when(i == 0)
    def _init():
        acc_pt[...] = jnp.zeros_like(acc_pt)
        acc_p[...] = jnp.zeros_like(acc_p)
        acc_t[...] = jnp.zeros_like(acc_t)

    p = jax.nn.sigmoid(p_ref[...].astype(jnp.float32))
    t = t_ref[...].astype(jnp.float32)

    if needs_mask:
        # Zero out padded / out-of-bounds tail elements (n_valid is static).
        br, lanes = p_ref.shape
        row = jax.lax.broadcasted_iota(jnp.int32, (br, lanes), 0)
        lane = jax.lax.broadcasted_iota(jnp.int32, (br, lanes), 1)
        idx = i * (br * lanes) + row * lanes + lane
        keep = idx < n_valid
        p = jnp.where(keep, p, 0.0)
        t = jnp.where(keep, t, 0.0)

    acc_pt[...] += p * t   # -> TP
    acc_p[...] += p        # -> TP + FP
    acc_t[...] += t        # -> TP + FN

    @pl.when(i == pl.num_programs(0) - 1)
    def _finalize():
        out_ref[0] = jnp.sum(acc_pt[...])
        out_ref[1] = jnp.sum(acc_p[...])
        out_ref[2] = jnp.sum(acc_t[...])


def _round_up(x, m):
    return (x + m - 1) // m * m


@functools.partial(jax.jit, static_argnames=("smooth", "alpha", "beta", "gamma"))
def focal_tversky_loss(predictions, targets, smooth=1.0, alpha=0.5, beta=0.5,
                       gamma=1.0):
    n = predictions.size
    p = predictions.reshape(-1)   # keep original dtype; cast happens in-kernel
    t = targets.reshape(-1)

    # Minimal zero pad so the flat view reshapes to (rows, 128) with rows % 8
    # == 0. For typical (power-of-two) sizes this is a no-op (no extra copy).
    align = _SUBLANES * _LANES
    n_pad = _round_up(n, align)
    if n_pad != n:
        p = jnp.pad(p, (0, n_pad - n))
        t = jnp.pad(t, (0, n_pad - n))

    rows = n_pad // _LANES
    block_rows = min(_MAX_BLOCK_ROWS, rows)
    num_blocks = pl.cdiv(rows, block_rows)
    # Mask whenever the tiled extent exceeds the true element count
    # (covers both the zero pad and any boundary-block padding).
    needs_mask = (num_blocks * block_rows * _LANES) != n

    p2d = p.reshape(rows, _LANES)
    t2d = t.reshape(rows, _LANES)

    kernel = functools.partial(_focal_tversky_sums_kernel,
                               n_valid=n, needs_mask=needs_mask)

    sums = pl.pallas_call(
        kernel,
        out_shape=jax.ShapeDtypeStruct((3,), jnp.float32),
        grid_spec=pltpu.PrefetchScalarGridSpec(
            num_scalar_prefetch=0,
            grid=(num_blocks,),
            in_specs=[
                pl.BlockSpec((block_rows, _LANES), lambda i: (i, 0)),
                pl.BlockSpec((block_rows, _LANES), lambda i: (i, 0)),
            ],
            out_specs=pl.BlockSpec(memory_space=pltpu.SMEM),
            scratch_shapes=[
                pltpu.VMEM((block_rows, _LANES), jnp.float32),
                pltpu.VMEM((block_rows, _LANES), jnp.float32),
                pltpu.VMEM((block_rows, _LANES), jnp.float32),
            ],
        ),
        compiler_params=pltpu.CompilerParams(
            dimension_semantics=("arbitrary",)),
    )(p2d, t2d)

    tp = sums[0]
    fp = sums[1] - tp   # sum((1-t)*p) == sum(p) - sum(p*t)
    fn = sums[2] - tp   # sum(t*(1-p)) == sum(t) - sum(p*t)
    tversky = (tp + smooth) / (tp + alpha * fp + beta * fn + smooth)
    return (1.0 - tversky) ** gamma


def _reference_loss(predictions, targets, smooth=1.0, alpha=0.5, beta=0.5,
                    gamma=1.0):
    p = jax.nn.sigmoid(predictions.reshape(-1).astype(jnp.float32))
    t = targets.reshape(-1).astype(jnp.float32)
    tp = jnp.sum(p * t)
    fp = jnp.sum((1.0 - t) * p)
    fn = jnp.sum(t * (1.0 - p))
    tversky = (tp + smooth) / (tp + alpha * fp + beta * fn + smooth)
    return (1.0 - tversky) ** gamma


if __name__ == "__main__":
    key = jax.random.PRNGKey(0)
    k1, k2 = jax.random.split(key)
    # NCHW, small shapes: batch=2, channels=4, spatial=16x16
    predictions = jax.random.normal(k1, (2, 4, 16, 16), dtype=jnp.float32)
    targets = (jax.random.uniform(k2, (2, 4, 16, 16)) > 0.5).astype(jnp.float32)

    loss = focal_tversky_loss(predictions, targets)
    loss = jax.block_until_ready(loss)

    ref = _reference_loss(predictions, targets)
    assert jnp.allclose(loss, ref, rtol=1e-5, atol=1e-6), (loss, ref)
    print("KERNEL_OK")
</pallas_src>

<mosaic_0001>
module attributes {stable_mosaic.version = 11 : i64} {
  func.func @_focal_tversky_sums_kernel(%arg0: i32, %arg1: memref<16x128xf32, #tpu.memory_space<vmem>>, %arg2: memref<16x128xf32, #tpu.memory_space<vmem>>, %arg3: memref<3xf32, #tpu.memory_space<smem>>, %arg4: memref<16x128xf32, #tpu.memory_space<vmem>>, %arg5: memref<16x128xf32, #tpu.memory_space<vmem>>, %arg6: memref<16x128xf32, #tpu.memory_space<vmem>>) attributes {dimension_semantics = [#tpu.dimension_semantics<arbitrary>], iteration_bounds = array<i64: 1>, scalar_prefetch = 0 : i64, scratch_operands = 3 : i64, tpu.core_type = #tpu.core_type<tc>, window_params = [{transform_indices = @transform_0, window_bounds = array<i64: 16, 128>}, {transform_indices = @transform_1, window_bounds = array<i64: 16, 128>}, {transform_indices = @transform_2, window_bounds = array<i64: 3>}]} {
    %c0_i32 = arith.constant 0 : i32
    %0 = arith.cmpi eq, %arg0, %c0_i32 : i32
    %1 = arith.extui %0 : i1 to i32
    %c0_i32_0 = arith.constant 0 : i32
    %2 = arith.cmpi ne, %1, %c0_i32_0 : i32
    scf.if %2 {
      %cst_18 = arith.constant 0.000000e+00 : f32
      %23 = vector.broadcast %cst_18 : f32 to vector<16x128xf32>
      %c0_19 = arith.constant 0 : index
      %c0_20 = arith.constant 0 : index
      %24 = vector.load %arg4[%c0_19, %c0_20] : memref<16x128xf32, #tpu.memory_space<vmem>>, vector<16x128xf32>
      tpu.vector_store %arg4[%c0_19, %c0_20], %23 {strides = array<i32>} : memref<16x128xf32, #tpu.memory_space<vmem>>, vector<16x128xf32>,
      %cst_21 = arith.constant 0.000000e+00 : f32
      %25 = vector.broadcast %cst_21 : f32 to vector<16x128xf32>
      %c0_22 = arith.constant 0 : index
      %c0_23 = arith.constant 0 : index
      %26 = vector.load %arg5[%c0_22, %c0_23] : memref<16x128xf32, #tpu.memory_space<vmem>>, vector<16x128xf32>
      tpu.vector_store %arg5[%c0_22, %c0_23], %25 {strides = array<i32>} : memref<16x128xf32, #tpu.memory_space<vmem>>, vector<16x128xf32>,
      %cst_24 = arith.constant 0.000000e+00 : f32
      %27 = vector.broadcast %cst_24 : f32 to vector<16x128xf32>
      %c0_25 = arith.constant 0 : index
      %c0_26 = arith.constant 0 : index
      %28 = vector.load %arg6[%c0_25, %c0_26] : memref<16x128xf32, #tpu.memory_space<vmem>>, vector<16x128xf32>
      tpu.vector_store %arg6[%c0_25, %c0_26], %27 {strides = array<i32>} : memref<16x128xf32, #tpu.memory_space<vmem>>, vector<16x128xf32>,
    } else {
    }
    %c0 = arith.constant 0 : index
    %c0_1 = arith.constant 0 : index
    %3 = vector.load %arg1[%c0, %c0_1] : memref<16x128xf32, #tpu.memory_space<vmem>>, vector<16x128xf32>
    %4 = arith.negf %3 : vector<16x128xf32>
    %5 = math.exp %4 : vector<16x128xf32>
    %cst = arith.constant 1.000000e+00 : f32
    %6 = vector.broadcast %cst : f32 to vector<16x128xf32>
    %7 = arith.addf %6, %5 : vector<16x128xf32>
    %8 = arith.divf %6, %7 : vector<16x128xf32>
    %c0_2 = arith.constant 0 : index
    %c0_3 = arith.constant 0 : index
    %9 = vector.load %arg2[%c0_2, %c0_3] : memref<16x128xf32, #tpu.memory_space<vmem>>, vector<16x128xf32>
    %c0_4 = arith.constant 0 : index
    %c0_5 = arith.constant 0 : index
    %10 = vector.load %arg4[%c0_4, %c0_5] : memref<16x128xf32, #tpu.memory_space<vmem>>, vector<16x128xf32>
    %11 = arith.mulf %8, %9 : vector<16x128xf32>
    %12 = arith.addf %10, %11 : vector<16x128xf32>
    %c0_6 = arith.constant 0 : index
    %c0_7 = arith.constant 0 : index
    %13 = vector.load %arg4[%c0_6, %c0_7] : memref<16x128xf32, #tpu.memory_space<vmem>>, vector<16x128xf32>
    tpu.vector_store %arg4[%c0_6, %c0_7], %12 {strides = array<i32>} : memref<16x128xf32, #tpu.memory_space<vmem>>, vector<16x128xf32>,
    %c0_8 = arith.constant 0 : index
    %c0_9 = arith.constant 0 : index
    %14 = vector.load %arg5[%c0_8, %c0_9] : memref<16x128xf32, #tpu.memory_space<vmem>>, vector<16x128xf32>
    %15 = arith.addf %14, %8 : vector<16x128xf32>
    %c0_10 = arith.constant 0 : index
    %c0_11 = arith.constant 0 : index
    %16 = vector.load %arg5[%c0_10, %c0_11] : memref<16x128xf32, #tpu.memory_space<vmem>>, vector<16x128xf32>
    tpu.vector_store %arg5[%c0_10, %c0_11], %15 {strides = array<i32>} : memref<16x128xf32, #tpu.memory_space<vmem>>, vector<16x128xf32>,
    %c0_12 = arith.constant 0 : index
    %c0_13 = arith.constant 0 : index
    %17 = vector.load %arg6[%c0_12, %c0_13] : memref<16x128xf32, #tpu.memory_space<vmem>>, vector<16x128xf32>
    %18 = arith.addf %17, %9 : vector<16x128xf32>
    %c0_14 = arith.constant 0 : index
    %c0_15 = arith.constant 0 : index
    %19 = vector.load %arg6[%c0_14, %c0_15] : memref<16x128xf32, #tpu.memory_space<vmem>>, vector<16x128xf32>
    tpu.vector_store %arg6[%c0_14, %c0_15], %18 {strides = array<i32>} : memref<16x128xf32, #tpu.memory_space<vmem>>, vector<16x128xf32>,
    %c0_i32_16 = arith.constant 0 : i32
    %20 = arith.cmpi eq, %arg0, %c0_i32_16 : i32
    %21 = arith.extui %20 : i1 to i32
    %c0_i32_17 = arith.constant 0 : i32
    %22 = arith.cmpi ne, %21, %c0_i32_17 : i32
    scf.if %22 {
      %c0_18 = arith.constant 0 : index
      %c0_19 = arith.constant 0 : index
      %23 = vector.load %arg4[%c0_18, %c0_19] : memref<16x128xf32, #tpu.memory_space<vmem>>, vector<16x128xf32>
      %24 = vector.shape_cast %23 : vector<16x128xf32> to vector<1x16x128xf32>
      %cst_20 = arith.constant dense<0.000000e+00> : vector<1xf32>
      %25 = vector.multi_reduction <add>, %24, %cst_20 [1, 2] : vector<1x16x128xf32> to vector<1xf32>
      %26 = vector.shape_cast %25 : vector<1xf32> to vector<1x1x1xf32>
      %27 = vector.extract %26[0, 0, 0] : f32 from vector<1x1x1xf32>
      %c0_21 = arith.constant 0 : index
      %28 = memref.load %arg3[%c0_21] : memref<3xf32, #tpu.memory_space<smem>>
      memref.store %27, %arg3[%c0_21] : memref<3xf32, #tpu.memory_space<smem>>
      %c0_22 = arith.constant 0 : index
      %c0_23 = arith.constant 0 : index
      %29 = vector.load %arg5[%c0_22, %c0_23] : memref<16x128xf32, #tpu.memory_space<vmem>>, vector<16x128xf32>
      %30 = vector.shape_cast %29 : vector<16x128xf32> to vector<1x16x128xf32>
      %cst_24 = arith.constant dense<0.000000e+00> : vector<1xf32>
      %31 = vector.multi_reduction <add>, %30, %cst_24 [1, 2] : vector<1x16x128xf32> to vector<1xf32>
      %32 = vector.shape_cast %31 : vector<1xf32> to vector<1x1x1xf32>
      %33 = vector.extract %32[0, 0, 0] : f32 from vector<1x1x1xf32>
      %c1 = arith.constant 1 : index
      %34 = memref.load %arg3[%c1] : memref<3xf32, #tpu.memory_space<smem>>
      memref.store %33, %arg3[%c1] : memref<3xf32, #tpu.memory_space<smem>>
      %c0_25 = arith.constant 0 : index
      %c0_26 = arith.constant 0 : index
      %35 = vector.load %arg6[%c0_25, %c0_26] : memref<16x128xf32, #tpu.memory_space<vmem>>, vector<16x128xf32>
      %36 = vector.shape_cast %35 : vector<16x128xf32> to vector<1x16x128xf32>
      %cst_27 = arith.constant dense<0.000000e+00> : vector<1xf32>
      %37 = vector.multi_reduction <add>, %36, %cst_27 [1, 2] : vector<1x16x128xf32> to vector<1xf32>
      %38 = vector.shape_cast %37 : vector<1xf32> to vector<1x1x1xf32>
      %39 = vector.extract %38[0, 0, 0] : f32 from vector<1x1x1xf32>
      %c2 = arith.constant 2 : index
      %40 = memref.load %arg3[%c2] : memref<3xf32, #tpu.memory_space<smem>>
      memref.store %39, %arg3[%c2] : memref<3xf32, #tpu.memory_space<smem>>
    } else {
    }
    return
  }
  func.func @transform_0(%arg0: i32) -> (i32, i32) {
    %c0_i32 = arith.constant 0 : i32
    %c0_i32_0 = arith.constant 0 : i32
    return %arg0, %c0_i32 : i32, i32
  }
  func.func @transform_1(%arg0: i32) -> (i32, i32) {
    %c0_i32 = arith.constant 0 : i32
    %c0_i32_0 = arith.constant 0 : i32
    return %arg0, %c0_i32 : i32, i32
  }
  func.func @transform_2(%arg0: i32) -> i32 {
    %c0_i32 = arith.constant 0 : i32
    %c0_i32_0 = arith.constant 0 : i32
    return %c0_i32 : i32
  }
}

</mosaic_0001>

<bundles_post_ra>
// kernel: focal_tversky_loss.1
= control target key start
LH: loop header
LB: loop body
LE: loop exit
PB: predicated region body
PF: predicated region fallthrough
CT: control target
= control target key end

     0   :  { %s180_s0 = inlined_call_operand.vmem [shape: f32[16,128], index: 0, kind: input, shape index: {}]   ;;  %s181_s1 = inlined_call_operand.vmem [shape: f32[16,128], index: 1, kind: input, shape index: {}]   ;;  %s182_s2 = inlined_call_operand.vmem [shape: f32[3], index: 2, kind: output, shape index: {}]  }
   0x1   :  { %v36_v0 = vld [vmem:[%s181_s1] sm:$0xff]  ;;  %v37_v1 = vld [vmem:[%s181_s1 + $0x8] sm:$0xff] }
   0x2   :  { %v22_v2 = vld [vmem:[%s180_s0] sm:$0xff]  ;;  %v91_v3 = vadd.f32 %v37_v1, %v36_v0  ;;  %v23_v4 = vld [vmem:[%s180_s0 + $0x8] sm:$0xff] }
   0x3   :  { %v118_v5 = vmul.f32 -1.442695, %v22_v2 }
   0x4   :  { %7 = vsyncpa [#allocation6], 0  ;;  %v119_v6 = vmul.f32 -1.442695, %v23_v4  ;;  %92 = vadd.xlane.f32.xlu1 %v91_v3  ;;  %s109_s18 = sshll.u32 %s182_s2, 4  ;;  %s110_s18 = int_to_ptr.vmem [resolvable:$true] %s109_s18 }
   0x5   :  { %127 = vpow2.f32 %v118_v5  ;;  %s135_s21 = scalar_lea.vmem %s110_s18, 16  ;;  %p140_p1 = scmp.lt.s32.totalorder %s110_s18, %s110_s18 }
   0x6   :  { %129 = vpow2.f32 %v119_v6  ;;  %p136_p0 = scmp.ne.s32.totalorder %s110_s18, %s135_s21  ;;  %p141_p2 = scmp.lt.s32.totalorder %s135_s21, %s135_s21 }
   0x8   :  { %p142_p3 = por %p141_p2, %p140_p1 }
   0xa   :  { %p143_p4 = pnand %p142_p3, %p136_p0 }
   0xf   :  { %v128_v7 = vpop.eup %127 }
  0x10   :  { %v130_v8 = vpop.eup %129  ;;  %v30_v9 = vadd.f32 1.0, %v128_v7 }
  0x11   :  { %v31_v10 = vadd.f32 1.0, %v130_v8 }
  0x12   :  { %131 = vrcp.f32 %v30_v9 }
  0x13   :  { %133 = vrcp.f32 %v31_v10 }
  0x1c   :  { %v132_v11 = vpop.eup %131 }
  0x1d   :  { %v134_v12 = vpop.eup %133  ;;  %v40_v13 = vmul.f32 %v132_v11, %v36_v0 }
  0x1e   :  { %v41_v14 = vmul.f32 %v134_v12, %v37_v1  ;;  %v77_v16 = vadd.f32 %v134_v12, %v132_v11 }
  0x20   :  { %v63_v15 = vadd.f32 %v41_v14, %v40_v13 }
  0x22   :  { %64 = vadd.xlane.f32.xlu0 %v63_v15 }
  0x26   :  { %78 = vadd.xlane.f32.xlu0 %v77_v16 }
  0x91   :  { %v93_v17 = vpop.xlane.xlu1 %92 }
  0x92   :  { %v94_v18 = vrot.slane %v93_v17, 4 }
  0x94   :  { %v95_v19 = vadd.f32 %v94_v18, %v93_v17 }
  0x96   :  { %v96_v23 = vrot.slane %v95_v19, 2 }
  0x98   :  { %v97_v29 = vadd.f32 %v96_v23, %v95_v19 }
  0x9a   :  { %v98_v34 = vrot.slane %v97_v29, 1 }
  0x9c   :  { %v99_v37 = vadd.f32 %v98_v34, %v97_v29 }
  0xaf   :  { %v65_v20 = vpop.xlane.xlu0 %64 }
  0xb0   :  { %v66_v21 = vrot.slane %v65_v20, 4 }
  0xb2   :  { %v67_v22 = vadd.f32 %v66_v21, %v65_v20 }
  0xb3   :  { %v79_v24 = vpop.xlane.xlu0 %78 }
  0xb4   :  { %v68_v25 = vrot.slane %v67_v22, 2  ;;  %v80_v26 = vrot.slane %v79_v24, 4 }
  0xb6   :  { %v81_v27 = vadd.f32 %v80_v26, %v79_v24  ;;  %v69_v28 = vadd.f32 %v68_v25, %v67_v22 }
  0xb8   :  { %v82_v30 = vrot.slane %v81_v27, 2  ;;  %v70_v31 = vrot.slane %v69_v28, 1 }
  0xba   :  { %v83_v32 = vadd.f32 %v82_v30, %v81_v27  ;;  %v71_v33 = vadd.f32 %v70_v31, %v69_v28 }
  0xbc   :  { %120 = vpush %v71_v33  ;;  %v84_v35 = vrot.slane %v83_v32, 1 }
  0xbe   :  { %v85_v36 = vadd.f32 %v84_v35, %v83_v32 }
  0xc0   :  { %122 = vpush %v85_v36 }
  0xc1   :  { %124 = vpush %v99_v37 }
  0xed   :  { %s121_s0 = spop %120 }
  0xee   :  { %74 = sst [smem:[#allocation5]] %s121_s0 }
  0xf1   :  { %s123_s19 = spop %122 }
  0xf2   :  { %88 = sst [smem:[#allocation5 + $0x1]] %s123_s19  ;;  %s125_s20 = spop %124 }
  0xf3   :  { %102 = sst [smem:[#allocation5 + $0x2]] %s125_s20 }
  0xf4   :  { %146 = shalt.err (!%p143_p4)
}
  0xf5   :  { %s149_s22 = smov [#allocation5]  }
  0xf6   :  { %112 = dma.smem_to_vmem %s149_s22, 16, %s110_s18, [#allocation6]  }
  0xf7   :  { %147 = dma.done.wait [#allocation6], 16  }
  0xf8   :  { %148 = vsyncadd [#allocation6], 4294967280 }
  0xf9   :  { %116 = sfence }
  0xfa   :  { %117 = vsyncpa [#allocation6], 1 }

</bundles_post_ra>
